<compile_context>
chip_gen: v5e
topology: v5e:2x2
jax: 0.10.0
libtpu: 0.0.40
codegen_flags: <defaults>
</compile_context>

<pallas_src>
from functools import partial

import jax
import jax.numpy as jnp
from jax.experimental import pallas as pl
from jax.experimental.pallas import tpu as pltpu

_LANE = 128


def _gumbel_channel_kernel(x_ref, m_ref, wT_ref, b_ref, out_ref,
                           acc_c_ref, acc_n_ref):
    """One (batch, hw_tile) grid step.

    x_ref : (1, C, T)      bf16   activation tile
    m_ref : (1, 1, T)      bf16   spatial-mask tile
    wT_ref: (C, Hd_pad)    f32    Linear weight (transposed, lane-padded)
    b_ref : (1, Hd_pad)    f32    Linear bias   (lane-padded)
    out   : (1, 1, Hd_pad) f32    hard channel mask for this batch element
    acc_c : (1, C)         f32    running sum_hw(x * mask)
    acc_n : (1, 1)         f32    running active-pixel count
    """
    hw_idx = pl.program_id(1)

    @pl.when(hw_idx == 0)
    def _init():
        acc_c_ref[...] = jnp.zeros_like(acc_c_ref)
        acc_n_ref[...] = jnp.zeros_like(acc_n_ref)

    # Stream bf16 from HBM, accumulate in f32 (single upcast per tile).
    x = x_ref[...].astype(jnp.float32)        # (1, C, T)
    m = m_ref[...].astype(jnp.float32)        # (1, 1, T)

    acc_c_ref[...] += jnp.sum(x * m, axis=-1)  # (1, C)   lane-reduce on XLU
    acc_n_ref[...] += jnp.sum(m, axis=-1)      # (1, 1)

    @pl.when(hw_idx == pl.num_programs(1) - 1)
    def _finalize():
        # MaskedAvePooling: pooled*(H*W)/active == sum(x*mask)/active (the H*W
        # factors cancel).  Divide is deferred past the matmul: one (1, Hd)
        # scale instead of a (1, C) divide, and it rides the EUP slot.
        # Zero-active guard: the PyTorch reference would produce NaN here; we
        # clamp to 1 so a fully-masked batch degenerates to logits == bias.
        active = jnp.maximum(acc_n_ref[...], 1.0)            # (1, 1)
        inv_active = pl.reciprocal(active, approx=True)      # (1, 1), EUP

        logits = jnp.dot(acc_c_ref[...], wT_ref[...],
                         preferred_element_type=jnp.float32)  # (1, Hd_pad)
        logits = logits * inv_active + b_ref[...]

        # GumbelSoftmax eval-mode forward: hard threshold at 0.
        # TODO(synk): training-mode Gumbel-noise sampling (straight-through)
        #             is not wired in; eval semantics (logits >= 0) only.
        out_ref[...] = (logits >= 0.0).astype(jnp.float32)[None]


def _round_up(v, m):
    return ((v + m - 1) // m) * m


def gumbel_channel_unit(x, meta, params, *, group_size=4, target_stage=(-1,),
                        hw_tile_target=512):
    """JAX/Pallas equivalent of GumbelChannelUnit.forward (eval mode)."""
    B, C, H, W = x.shape
    outplanes = params["outplanes"]

    # Early-exit branch: stage not targeted -> all-ones channel mask.
    if meta["stage_id"] not in target_stage:
        return jnp.ones((B, outplanes), jnp.float32), meta

    wT = params["wT"]          # (C, Hd)  transposed PyTorch Linear weight
    bias = params["b"]         # (1, Hd)
    Hd = wT.shape[1]
    hw = H * W

    # Lane-pad the Linear output dim once (weights are static) so the MXU
    # result and the kernel's output store are lane-dense; slice off below.
    Hd_pad = _round_up(Hd, _LANE)
    if Hd_pad != Hd:
        wT_p = jnp.zeros((C, Hd_pad), jnp.float32).at[:, :Hd].set(wT)
        b_p = jnp.zeros((1, Hd_pad), jnp.float32).at[:, :Hd].set(bias)
    else:
        wT_p, b_p = wT.astype(jnp.float32), bias.astype(jnp.float32)

    # HW tiling: ~512 lanes per tile (128-aligned).  Zero-padding the tail is
    # exact: padded pixels add nothing to either the masked sum or the
    # active-pixel count.
    hw_tile = min(hw_tile_target, _round_up(hw, _LANE))
    hw_pad = _round_up(hw, hw_tile)
    n_hw = hw_pad // hw_tile

    # Stream activations and mask as bf16 (kernel is HBM-bandwidth bound).
    x_flat = x.reshape(B, C, hw).astype(jnp.bfloat16)
    m_flat = meta["masked_feat"].reshape(B, 1, hw).astype(jnp.bfloat16)
    if hw_pad != hw:
        x_flat = jnp.pad(x_flat, ((0, 0), (0, 0), (0, hw_pad - hw)))
        m_flat = jnp.pad(m_flat, ((0, 0), (0, 0), (0, hw_pad - hw)))

    out = pl.pallas_call(
        _gumbel_channel_kernel,
        out_shape=jax.ShapeDtypeStruct((B, 1, Hd_pad), jnp.float32),
        grid_spec=pltpu.PrefetchScalarGridSpec(
            num_scalar_prefetch=0,
            grid=(B, n_hw),
            in_specs=[
                # NOTE: if DMA is still exposed after tiling, bump depth with
                # pipeline_mode=pl.Buffered(3) on this x spec.
                pl.BlockSpec((1, C, hw_tile), lambda bi, hi: (bi, 0, hi)),
                pl.BlockSpec((1, 1, hw_tile), lambda bi, hi: (bi, 0, hi)),
                pl.BlockSpec((C, Hd_pad), lambda bi, hi: (0, 0)),
                pl.BlockSpec((1, Hd_pad), lambda bi, hi: (0, 0)),
            ],
            out_specs=pl.BlockSpec((1, 1, Hd_pad), lambda bi, hi: (bi, 0, 0)),
            scratch_shapes=[
                pltpu.VMEM((1, C), jnp.float32),   # sum_hw(x * mask)
                pltpu.VMEM((1, 1), jnp.float32),   # active pixel count
            ],
        ),
        compiler_params=pltpu.CompilerParams(
            dimension_semantics=("parallel", "arbitrary"),
            vmem_limit_bytes=32 * 1024 * 1024,     # headroom for v7x's 64 MiB
        ),
    )(x_flat, m_flat, wT_p, b_p)

    mask_c = out[:, 0, :Hd]                        # (B, Hd)

    # NOTE: Python-side list mutation; not safe under jit/scan tracing.
    meta["channel_vector"].append(mask_c)

    # expand(mask_c, group_size): each group decision repeated group_size
    # times along the channel axis -> (B, outplanes).
    mask_full = jnp.repeat(mask_c, group_size, axis=1)
    return mask_full, meta


if __name__ == "__main__":
    key = jax.random.PRNGKey(0)
    B, inplanes, Hs, Ws = 2, 4, 32, 32              # HW=1024 -> 2 pipelined tiles of 512
    outplanes, group_size = 16, 4
    Hd = outplanes // group_size

    k1, k2, k3, k4 = jax.random.split(key, 4)

    # Inputs (NCHW) and a binary spatial mask (B, 1, H, W) with >=1 active pixel.
    x = jax.random.normal(k1, (B, inplanes, Hs, Ws), jnp.float32)
    spatial_mask = (jax.random.uniform(k2, (B, 1, Hs, Ws)) > 0.5).astype(jnp.float32)
    spatial_mask = spatial_mask.at[:, :, 0, 0].set(1.0)

    # Deterministic init of channel_saliency_predictor = Linear(inplanes, Hd).
    bound = 1.0 / (inplanes ** 0.5)
    w = jax.random.uniform(k3, (Hd, inplanes), jnp.float32, -bound, bound)   # torch (out, in)
    bias = jax.random.uniform(k4, (Hd,), jnp.float32, -bound, bound)
    params = {"wT": w.T, "b": bias.reshape(1, Hd), "outplanes": outplanes}

    meta = {"stage_id": -1, "masked_feat": spatial_mask, "channel_vector": []}

    out, meta = gumbel_channel_unit(
        x, meta, params, group_size=group_size, target_stage=(-1,)
    )
    out = jax.block_until_ready(out)
    mask_c = meta["channel_vector"][0]

    # Pure-JAX reference (from the same bf16-quantized stream the kernel sees).
    xq = x.astype(jnp.bfloat16).astype(jnp.float32).reshape(B, inplanes, -1)
    mq = spatial_mask.astype(jnp.bfloat16).astype(jnp.float32).reshape(B, 1, -1)
    ctx = jnp.sum(xq * mq, axis=-1) / jnp.sum(mq, axis=-1)        # (B, C)
    ref_logits = ctx @ w.T + bias                                  # (B, Hd)
    ref_mask = (ref_logits >= 0.0).astype(jnp.float32)

    assert out.shape == (B, outplanes)
    assert mask_c.shape == (B, Hd)
    assert bool(jnp.all((out == 0.0) | (out == 1.0)))
    # Match the reference everywhere the decision is not numerically on the threshold.
    stable = jnp.abs(ref_logits) > 1e-5
    assert bool(jnp.all(jnp.where(stable, mask_c == ref_mask, True)))
    # expand(): each group decision repeated group_size times.
    assert bool(jnp.all(out == jnp.repeat(mask_c, group_size, axis=1)))
    print("KERNEL_OK")
</pallas_src>

<mosaic_0001>
module attributes {stable_mosaic.version = 11 : i64} {
  func.func @_gumbel_channel_kernel(%arg0: i32, %arg1: i32, %arg2: memref<1x4x512xbf16, #tpu.memory_space<vmem>>, %arg3: memref<1x1x512xbf16, #tpu.memory_space<vmem>>, %arg4: memref<4x128xf32, #tpu.memory_space<vmem>>, %arg5: memref<1x128xf32, #tpu.memory_space<vmem>>, %arg6: memref<1x1x128xf32, #tpu.memory_space<vmem>>, %arg7: memref<1x4xf32, #tpu.memory_space<vmem>>, %arg8: memref<1x1xf32, #tpu.memory_space<vmem>>) attributes {dimension_semantics = [#tpu.dimension_semantics<parallel>, #tpu.dimension_semantics<arbitrary>], iteration_bounds = array<i64: 2, 2>, scalar_prefetch = 0 : i64, scratch_operands = 2 : i64, tpu.core_type = #tpu.core_type<tc>, window_params = [{transform_indices = @transform_0, window_bounds = array<i64: 1, 4, 512>}, {transform_indices = @transform_1, window_bounds = array<i64: 1, 1, 512>}, {pipeline_mode = #tpu.pipeline_mode<synchronous>, transform_indices = @transform_2, window_bounds = array<i64: 4, 128>}, {pipeline_mode = #tpu.pipeline_mode<synchronous>, transform_indices = @transform_3, window_bounds = array<i64: 1, 128>}, {transform_indices = @transform_4, window_bounds = array<i64: 1, 1, 128>}]} {
    %c0_i32 = arith.constant 0 : i32
    %0 = arith.cmpi eq, %arg1, %c0_i32 : i32
    %1 = arith.extui %0 : i1 to i32
    %c0_i32_0 = arith.constant 0 : i32
    %2 = arith.cmpi ne, %1, %c0_i32_0 : i32
    scf.if %2 {
      %cst_16 = arith.constant 0.000000e+00 : f32
      %20 = vector.broadcast %cst_16 : f32 to vector<1x4xf32>
      %c0_17 = arith.constant 0 : index
      %c0_18 = arith.constant 0 : index
      %21 = vector.load %arg7[%c0_17, %c0_18] : memref<1x4xf32, #tpu.memory_space<vmem>>, vector<1x4xf32>
      tpu.vector_store %arg7[%c0_17, %c0_18], %20 {strides = array<i32>} : memref<1x4xf32, #tpu.memory_space<vmem>>, vector<1x4xf32>,
      %cst_19 = arith.constant 0.000000e+00 : f32
      %22 = vector.broadcast %cst_19 : f32 to vector<1x1xf32>
      %c0_20 = arith.constant 0 : index
      %c0_21 = arith.constant 0 : index
      %23 = vector.load %arg8[%c0_20, %c0_21] : memref<1x1xf32, #tpu.memory_space<vmem>>, vector<1x1xf32>
      tpu.vector_store %arg8[%c0_20, %c0_21], %22 {strides = array<i32>} : memref<1x1xf32, #tpu.memory_space<vmem>>, vector<1x1xf32>,
    } else {
    }
    %c0 = arith.constant 0 : index
    %c0_1 = arith.constant 0 : index
    %c0_2 = arith.constant 0 : index
    %3 = vector.load %arg2[%c0, %c0_1, %c0_2] : memref<1x4x512xbf16, #tpu.memory_space<vmem>>, vector<1x4x512xbf16>
    %4 = arith.extf %3 : vector<1x4x512xbf16> to vector<1x4x512xf32>
    %c0_3 = arith.constant 0 : index
    %c0_4 = arith.constant 0 : index
    %c0_5 = arith.constant 0 : index
    %5 = vector.load %arg3[%c0_3, %c0_4, %c0_5] : memref<1x1x512xbf16, #tpu.memory_space<vmem>>, vector<1x1x512xbf16>
    %6 = arith.extf %5 : vector<1x1x512xbf16> to vector<1x1x512xf32>
    %c0_6 = arith.constant 0 : index
    %c0_7 = arith.constant 0 : index
    %7 = vector.load %arg7[%c0_6, %c0_7] : memref<1x4xf32, #tpu.memory_space<vmem>>, vector<1x4xf32>
    %8 = vector.broadcast %6 : vector<1x1x512xf32> to vector<1x4x512xf32>
    %9 = arith.mulf %4, %8 : vector<1x4x512xf32>
    %cst = arith.constant dense<0.000000e+00> : vector<1x4xf32>
    %10 = vector.multi_reduction <add>, %9, %cst [2] : vector<1x4x512xf32> to vector<1x4xf32>
    %11 = arith.addf %7, %10 : vector<1x4xf32>
    %c0_8 = arith.constant 0 : index
    %c0_9 = arith.constant 0 : index
    %12 = vector.load %arg7[%c0_8, %c0_9] : memref<1x4xf32, #tpu.memory_space<vmem>>, vector<1x4xf32>
    tpu.vector_store %arg7[%c0_8, %c0_9], %11 {strides = array<i32>} : memref<1x4xf32, #tpu.memory_space<vmem>>, vector<1x4xf32>,
    %c0_10 = arith.constant 0 : index
    %c0_11 = arith.constant 0 : index
    %13 = vector.load %arg8[%c0_10, %c0_11] : memref<1x1xf32, #tpu.memory_space<vmem>>, vector<1x1xf32>
    %cst_12 = arith.constant dense<0.000000e+00> : vector<1x1xf32>
    %14 = vector.multi_reduction <add>, %6, %cst_12 [2] : vector<1x1x512xf32> to vector<1x1xf32>
    %15 = arith.addf %13, %14 : vector<1x1xf32>
    %c0_13 = arith.constant 0 : index
    %c0_14 = arith.constant 0 : index
    %16 = vector.load %arg8[%c0_13, %c0_14] : memref<1x1xf32, #tpu.memory_space<vmem>>, vector<1x1xf32>
    tpu.vector_store %arg8[%c0_13, %c0_14], %15 {strides = array<i32>} : memref<1x1xf32, #tpu.memory_space<vmem>>, vector<1x1xf32>,
    %c1_i32 = arith.constant 1 : i32
    %17 = arith.cmpi eq, %arg1, %c1_i32 : i32
    %18 = arith.extui %17 : i1 to i32
    %c0_i32_15 = arith.constant 0 : i32
    %19 = arith.cmpi ne, %18, %c0_i32_15 : i32
    scf.if %19 {
      %c0_16 = arith.constant 0 : index
      %c0_17 = arith.constant 0 : index
      %20 = vector.load %arg8[%c0_16, %c0_17] : memref<1x1xf32, #tpu.memory_space<vmem>>, vector<1x1xf32>
      %cst_18 = arith.constant 1.000000e+00 : f32
      %21 = vector.broadcast %cst_18 : f32 to vector<1x1xf32>
      %22 = arith.maximumf %20, %21 : vector<1x1xf32>
      %23 = tpu.reciprocal %22 {approx = true} : vector<1x1xf32> -> vector<1x1xf32>
      %c0_19 = arith.constant 0 : index
      %c0_20 = arith.constant 0 : index
      %24 = vector.load %arg7[%c0_19, %c0_20] : memref<1x4xf32, #tpu.memory_space<vmem>>, vector<1x4xf32>
      %c0_21 = arith.constant 0 : index
      %c0_22 = arith.constant 0 : index
      %25 = vector.load %arg4[%c0_21, %c0_22] : memref<4x128xf32, #tpu.memory_space<vmem>>, vector<4x128xf32>
      %cst_23 = arith.constant dense<0.000000e+00> : vector<1x128xf32>
      %26 = tpu.matmul %24, %25, %cst_23 {dimension_numbers = #tpu.dot_dimension_numbers<[1], [0], [0], [1], [0, 0, 1, 1], [], []>} : vector<1x4xf32>, vector<4x128xf32>, vector<1x128xf32> -> vector<1x128xf32>
      %27 = vector.broadcast %23 : vector<1x1xf32> to vector<1x128xf32>
      %28 = arith.mulf %26, %27 : vector<1x128xf32>
      %c0_24 = arith.constant 0 : index
      %c0_25 = arith.constant 0 : index
      %29 = vector.load %arg5[%c0_24, %c0_25] : memref<1x128xf32, #tpu.memory_space<vmem>>, vector<1x128xf32>
      %30 = arith.addf %28, %29 : vector<1x128xf32>
      %cst_26 = arith.constant 0.000000e+00 : f32
      %31 = vector.broadcast %cst_26 : f32 to vector<1x128xf32>
      %32 = arith.cmpf oge, %30, %31 : vector<1x128xf32>
      %33 = arith.extui %32 : vector<1x128xi1> to vector<1x128xi32>
      %34 = arith.sitofp %33 : vector<1x128xi32> to vector<1x128xf32>
      %35 = vector.shape_cast %34 : vector<1x128xf32> to vector<1x1x128xf32>
      %c0_27 = arith.constant 0 : index
      %c0_28 = arith.constant 0 : index
      %c0_29 = arith.constant 0 : index
      %36 = vector.load %arg6[%c0_27, %c0_28, %c0_29] : memref<1x1x128xf32, #tpu.memory_space<vmem>>, vector<1x1x128xf32>
      tpu.vector_store %arg6[%c0_27, %c0_28, %c0_29], %35 {strides = array<i32>} : memref<1x1x128xf32, #tpu.memory_space<vmem>>, vector<1x1x128xf32>,
    } else {
    }
    return
  }
  func.func @transform_0(%arg0: i32, %arg1: i32) -> (i32, i32, i32) {
    %c0_i32 = arith.constant 0 : i32
    %c0_i32_0 = arith.constant 0 : i32
    return %arg0, %c0_i32, %arg1 : i32, i32, i32
  }
  func.func @transform_1(%arg0: i32, %arg1: i32) -> (i32, i32, i32) {
    %c0_i32 = arith.constant 0 : i32
    %c0_i32_0 = arith.constant 0 : i32
    return %arg0, %c0_i32, %arg1 : i32, i32, i32
  }
  func.func @transform_2(%arg0: i32, %arg1: i32) -> (i32, i32) {
    %c0_i32 = arith.constant 0 : i32
    %c0_i32_0 = arith.constant 0 : i32
    %c0_i32_1 = arith.constant 0 : i32
    return %c0_i32, %c0_i32_0 : i32, i32
  }
  func.func @transform_3(%arg0: i32, %arg1: i32) -> (i32, i32) {
    %c0_i32 = arith.constant 0 : i32
    %c0_i32_0 = arith.constant 0 : i32
    %c0_i32_1 = arith.constant 0 : i32
    return %c0_i32, %c0_i32_0 : i32, i32
  }
  func.func @transform_4(%arg0: i32, %arg1: i32) -> (i32, i32, i32) {
    %c0_i32 = arith.constant 0 : i32
    %c0_i32_0 = arith.constant 0 : i32
    %c0_i32_1 = arith.constant 0 : i32
    return %arg0, %c0_i32, %c0_i32_0 : i32, i32, i32
  }
}

</mosaic_0001>

<bundles_post_ra>
// kernel: tpu_custom_call.1
= control target key start
LH: loop header
LB: loop body
LE: loop exit
PB: predicated region body
PF: predicated region fallthrough
CT: control target
= control target key end

     0   :  { %9 = vsyncpa [#allocation5], 0  ;;  %s1028_s0 = inlined_call_operand.hbm [shape: bf16[2,4,1024], index: 0, kind: input, shape index: {}]   ;;  %s1029_s1 = inlined_call_operand.vmem [shape: bf16[2,1,1024], index: 1, kind: input, shape index: {}]   ;;  %s1030_s2 = inlined_call_operand.vmem [shape: f32[4,128], index: 2, kind: input, shape index: {}]   ;;  %s1031_s3 = inlined_call_operand.vmem [shape: f32[1,128], index: 3, kind: input, shape index: {}]   ;;  %s1032_s4 = inlined_call_operand.hbm [shape: f32[2,1,128], index: 4, kind: output, shape index: {}]  }
   0x1   :  { %11 = vsyncpa [#allocation5 + $0x1], 0 }
   0x2   :  { %12 = vsyncpa [#allocation6], 0 }
   0x3   :  { %14 = vsyncpa [#allocation6 + $0x1], 0  ;;  %s833_s15 = smov 0   ;;  %s835_s16 = smov 0  }
   0x4   :  { %s837_s17 = smov 0   ;;  %s839_s18 = smov 0  }
   0x5   :  { %s841_s19 = smov 0   ;;  %s843_s20 = smov 0  }
   0x6   :  { %s845_s21 = smov 0   ;;  %s847_s22 = smov 0  }
   0x7   :  { %s849_s23 = smov 0   ;;  %s851_s24 = smov 0  }
   0x8   :  { %s853_s25 = smov 0  }
   0x9 LB: > { %1036 = sst [smem:[#allocation10_spill]] %s770_s17  ;;  %s521_s26 = sadd.s32 4294967295, %s802_s25   ;;  %s802_s25 = sphi %s853_s25, %s20_s25   ;;  %s798_s24 = sphi %s851_s24, %s1058_s24   ;;  %s794_s23 = sphi %s849_s23, %s1057_s23   ;;  %s790_s22 = sphi %s847_s22, %s1056_s22   ;;  %s786_s21 = sphi %s845_s21, %s1055_s21   ;;  %s782_s20 = sphi %s843_s20, %s1054_s20   ;;  %s778_s19 = sphi %s841_s19, %s1053_s19   ;;  %s774_s18 = sphi %s839_s18, %s1052_s18   ;;  %s770_s17 = sphi %s837_s17, %s1046_s17   ;;  %s766_s16 = sphi %s835_s16, %s1051_s16   ;;  %s762_s15 = sphi %s833_s15, %s1050_s15  }
   0xa   : > { %s522_s27 = sadd.s32 4294967294, %s802_s25   ;;  %s29_s28 = sadd.s32 1, %s794_s23 }
   0xb   : > { %s32_s29 = sadd.s32 1, %s798_s24  ;;  %p30_p0 = scmp.ge.s32.totalorder %s29_s28, 2 }
   0xc   : > { %s41_s30 = sadd.s32 1, %s782_s20  ;;  %p48_p1 = scmp.ne.s32.totalorder %s782_s20, %s778_s19 }
   0xd   : > { %p49_p2 = scmp.eq.s32.totalorder %s802_s25, 0  ;;  %s1060_s28 = smov (%p30_p0, %s29_s28), 0 }
   0xe   : > { %1037 = sst [smem:[#allocation11_spill]] %s1060_s28  ;;  %s1062_s29 = smov (!%p30_p0, %s32_s29), %s798_s24 }
   0xf   : > { %s37_s5 = ssub.s32 %s794_s23, %s1060_s28  ;;  %p899_p3 = por %p49_p2, %p48_p1 }
  0x10   : > { %p34_p4 = scmp.ge.s32.totalorder %s1062_s29, 2  ;;  %p54_p5 = scmp.ne.s32.totalorder %s778_s19, %s774_s18 }
  0x11   : > { %p55_p6 = scmp.eq.s32.totalorder %s521_s26, 0  ;;  %s137_s7 = sadd.s32 1, %s770_s17 }
  0x12   : > { %s1064_s29 = smov (%p34_p4, %s1062_s29), 0  ;;  %p147_p8 = scmp.ne.s32.totalorder %s770_s17, %s766_s16 }
  0x13   : > { %1039 = sst [smem:[#allocation12_spill]] %s1064_s29  ;;  %p907_p7 = por %p55_p6, %p54_p5 }
  0x14   : > { %s36_s9 = ssub.s32 %s798_s24, %s1064_s29  ;;  %p148_p9 = scmp.eq.s32.totalorder %s521_s26, 3 }
  0x15   : > { %s38_s10 = sor.u32 %s37_s5, %s36_s9  ;;  %p135_p10 = scmp.eq.s32.totalorder %s36_s9, 0 }
  0x16   : > { %p39_p11 = scmp.eq.s32.totalorder %s38_s10, 0  ;;  %p915_p12 = por %p148_p9, %p147_p8 }
  0x17   : > { %s920_s12 = scalar_select %p135_p10, %s770_s17, %s137_s7  }
  0x18   : > { %s923_s13 = scalar_select %p39_p11, %s782_s20, %s41_s30  }
  0x19   : > { %1042 = sst [smem:[#allocation13_spill]] %s920_s12  ;;  %p153_p13 = scmp.ne.s32.totalorder %s766_s16, %s762_s15 }
  0x1a   : > { %1043 = sst [smem:[#allocation14_spill]] %s923_s13  ;;  %p154_p0 = scmp.eq.s32.totalorder %s522_s27, 3 }
  0x1b   : > { %p552_p1 = scmp.lt.s32.totalorder %s802_s25, 4  ;;  %s180_s18 = sand.u32 1, %s782_s20  }
  0x1c   : > { %p928_p2 = por %p154_p0, %p153_p13  ;;  %s525_s26 = sshll.u32 %s180_s18, 3 }
  0x1d   : > { %s526_s5 = sshll.u32 %s794_s23, 2  ;;  %s527_s9 = sshll.u32 %s798_s24, 3 }
  0x1e   : > { %s184_s10 = scalar_lea.vmem [#allocation4], %s525_s26  ;;  %s189_s28 = sadd.s32 %s527_s9, %s526_s5 }
  0x1f   : > { %s195_s29 = sshll.u32 %s184_s10, 4  ;;  %s528_s7 = sshll.u32 %s189_s28, 1  ;;  %s196_s29 = int_to_ptr.vmem [resolvable:$true] %s195_s29 }
  0x20   : > { %p545_p4 = pnand %p552_p1, %p899_p3  ;;  %s191_s27 = scalar_lea.hbm %s1028_s0, %s528_s7 }
  0x21   : > { %p529_p5 = scmp.ge.s32.totalorder %s802_s25, 1  ;;  %s193_s12 = sshll.u32 %s191_s27, 4  ;;  %s194_s12 = int_to_ptr.hbm [resolvable:$true] %s193_s12 }
  0x22   : > { %p212_p6 = scmp.lt.s32.totalorder %s802_s25, 5  ;;  %s181_s17 = scalar_lea.sflag [#allocation5], %s180_s18 }
  0x23   : > { %547 = dma.hbm_to_vmem [thread:$0]  (!%p545_p4), %s194_s12, 128, %s196_s29, %s181_s17  }
  0x24   : > { %p213_p8 = pnand %p529_p5, %p212_p6 }
  0x25   : > { %s218_s26 = sand.u32 (!%p213_p8), 1, %s778_s19  }
  0x26   : > { %216 = sbr.rel (%p213_p8) target bundleno = 487 (0x1e7), region = 36  ;;  %s530_s5 = sshll.u32 (!%p213_p8), %s218_s26, 3 }
  0x27   : > { %s219_s9 = scalar_lea.sflag (!%p213_p8), [#allocation5], %s218_s26  ;;  %s222_s28 = scalar_lea.vmem (!%p213_p8), [#allocation4], %s530_s5 }
  0x2b   : > { %753 = dma.done.wait (%p907_p7), %s219_s9, 128  }
  0x2c   : > { %755 = vsyncadd (%p907_p7), %s219_s9, 4294967168  ;;  %s253_s6 = sand.u32 1, %s766_s16   ;;  %s531_s17 = sshll.u32 %s786_s21, 2 }
  0x2d   : > { %p257_p3 = scmp.lt.s32.totalorder %s790_s22, 1  ;;  %p259_p9 = scmp.lt.s32.totalorder %s531_s17, 7 }
  0x2e   : > { %s956_s8 = scalar_lea.vmem [#allocation7], %s253_s6  ;;  %p533_p7 = scmp.ne.s32.totalorder %s786_s21, 0 }
  0x2f   : > { %s258_s29 = scalar_select %p257_p3, %s790_s22, 1 }
  0x30   : > { %s1066_s17 = smov (!%p259_p9, %s531_s17), 7  ;;  %268 = sbr.rel (%p533_p7) target bundleno = 56 (0x38), region = 44 }
  0x31   : > { %s532_s12 = sshll.u32 %s258_s29, 3 }
  0x32   : > { %s262_s13 = sadd.s32 %s532_s12, %s1066_s17 }
  0x33   : > { %s263_s7 = scalar_lea.vmem %s1029_s1, %s262_s13 }
  0x35   : > { %vm269_vm0 = vcmask 24576   ;;  %vm271_vm1 = vcmask 0   ;;  %v804_v0 = vmov 0.0  }
  0x36   : > { %270 = vst.msk [vmem:[#allocation2] sm:$0x1] %vm269_vm0, %v804_v0 }
  0x37   : > { %272 = vst.msk [vmem:[#allocation3] sm:$0x1] %vm271_vm1, %v804_v0 }
  0x38 PF: > { %v276_v1 = vld [vmem:[%s263_s7] sm:$0xf]  ;;  %v273_v3 = vld [vmem:[%s222_s28] sm:$0xff]  ;;  %vm298_vm2 = vcmask 1043456   ;;  %v805_v31 = vmov 0   ;;  %vm351_vm3 = vcmask 1040384   ;;  %v343_v48 = vlaneseq }
  0x39   : > { %v277_v2 = vunpack.c.l.bf16 %v276_v1  ;;  %v274_v12 = vunpack.c.l.bf16 %v273_v3  ;;  %v275_v13 = vunpack.c.h.bf16 %v273_v3  ;;  %646 = vset.pattern.permute.xlu0 %v805_v31  ;;  %vm362_vm4 = vcmask 0   ;;  %p534_p10 = scmp.ne.s32.totalorder %s786_s21, 1 }
  0x3a   : > { %v344_v49 = vand.u32 127, %v343_v48  ;;  %vm348_vm5 = vcmask 24576  }
  0x3b   : > { %v280_v4 = vperm.slane %v277_v2, 0  ;;  %v281_v5 = vperm.slane %v277_v2, 2  ;;  %v282_v6 = vperm.slane %v277_v2, 4  ;;  %v283_v7 = vperm.slane %v277_v2, 6 }
  0x3d   : > { %v288_v8 = vperm.slane %v280_v4, 0  ;;  %v289_v9 = vperm.slane %v281_v5, 0  ;;  %v290_v10 = vperm.slane %v282_v6, 0  ;;  %v291_v11 = vperm.slane %v283_v7, 0  ;;  %v278_v50 = vld [vmem:[#allocation2] sm:$0x1] }
  0x3e   : > { %v352_v32 = vsel %vm351_vm3, %v280_v4, 0.0  ;;  %v353_v33 = vsel %vm351_vm3, %v281_v5, 0.0  ;;  %v355_v35 = vsel %vm351_vm3, %v282_v6, 0.0  ;;  %v357_v37 = vsel %vm351_vm3, %v283_v7, 0.0  ;;  %v350_v45 = vld [vmem:[#allocation3] sm:$0x1] }
  0x3f   : > { %v296_v14 = vrot.slane %v289_v9, 4  ;;  %v297_v15 = vrot.slane %v291_v11, 4  ;;  %v354_v34 = vadd.f32 %v353_v33, %v352_v32 }
  0x41   : > { %v299_v16 = vsel %vm298_vm2, %v288_v8, %v296_v14  ;;  %v300_v17 = vsel %vm298_vm2, %v290_v10, %v297_v15  ;;  %v356_v36 = vadd.f32 %v355_v35, %v354_v34 }
  0x42   : > { %v303_v18 = vmul.f32 %v299_v16, %v274_v12  ;;  %v304_v19 = vmul.f32 %v300_v17, %v275_v13 }
  0x43   : > { %v358_v38 = vadd.f32 %v357_v37, %v356_v36 }
  0x44   : > { %307 = vst [vmem:[#allocation1] ss:$2 sm:$0xff] %v303_v18 }
  0x45   : > { %309 = vst [vmem:[#allocation1 + $0x10] ss:$2 sm:$0xff] %v304_v19  ;;  %359 = vadd.xlane.f32.xlu1 %v358_v38 }
  0x4b   : > { %v310_v20 = vld.sshfl [vmem:[#allocation1] sm:$0xff pattern:$0x75316420]  ;;  %v311_v21 = vld.sshfl [vmem:[#allocation1 + $0x8] sm:$0xff pattern:$0x75316420] }
  0x4c   : > { %v312_v22 = vld.sshfl [vmem:[#allocation1 + $0x10] sm:$0xff pattern:$0x75316420]  ;;  %v313_v23 = vld.sshfl [vmem:[#allocation1 + $0x18] sm:$0xff pattern:$0x75316420] }
  0x4d   : > { %v318_v24 = vsel %vm298_vm2, %v310_v20, 0.0  ;;  %v319_v25 = vsel %vm298_vm2, %v311_v21, 0.0  ;;  %v321_v26 = vsel %vm298_vm2, %v312_v22, 0.0  ;;  %v323_v28 = vsel %vm298_vm2, %v313_v23, 0.0 }
  0x4e   : > { %v320_v27 = vadd.f32 %v319_v25, %v318_v24 }
  0x50   : > { %v322_v29 = vadd.f32 %v321_v26, %v320_v27 }
  0x52   : > { %v324_v30 = vadd.f32 %v323_v28, %v322_v29 }
  0x54   : > { %325 = vadd.xlane.f32.xlu0 %v324_v30 }
  0xb8   : > { %v360_v46 = vpop.xlane.xlu1 %359 }
  0xb9   : > { %v361_v47 = vadd.f32 %v360_v46, %v350_v45 }
  0xbb   : > { %363 = vst.msk [vmem:[#allocation3] sm:$0x1] %vm362_vm4, %v361_v47 }
  0xc7   : > { %v326_v39 = vpop.xlane.xlu0 %325 }
  0xc8   : > { %v328_v40 = vperm.slane %v326_v39, 0  ;;  %v329_v41 = vperm.slane %v326_v39, 1  ;;  %v330_v42 = vperm.slane %v326_v39, 2  ;;  %v331_v43 = vperm.slane %v326_v39, 3 }
  0xca   : > { %332 = vst [vmem:[#allocation1] ss:$9 sm:$0xff] %v328_v40 }
  0xcb   : > { %334 = vst [vmem:[#allocation1 + $0x1] ss:$9 sm:$0xff] %v329_v41 }
  0xcc   : > { %336 = vst [vmem:[#allocation1 + $0x2] ss:$9 sm:$0xff] %v330_v42 }
  0xcd   : > { %338 = vst [vmem:[#allocation1 + $0x3] ss:$9 sm:$0xff] %v331_v43 }
  0xd4   : > { %v339_v44 = vld [vmem:[#allocation1] sm:$0xff] }
  0xd5   : > { %341 = vperm.xlu0 %646, %v339_v44  }
 0x147   : > { %v342_v51 = vpop.permute.xlu0 %341 }
 0x148   : > { %v345_v52 = vperm.slane %v342_v51, %v344_v49  ;;  %367 = sbr.rel (%p534_p10) target bundleno = 473 (0x1d9), region = 48 }
 0x14a   : > { %v347_v53 = vadd.f32 %v345_v52, %v278_v50 }
 0x14c   : > { %349 = vst.msk [vmem:[#allocation2] sm:$0x1] %vm348_vm5, %v347_v53 }
 0x14d   : > { %v372_v54 = vld [vmem:[%s1030_s2] sm:$0xf]  ;;  %vm373_vm6 = vcmask 31744   ;;  %v806_v56 = vmov 0   ;;  %v368_v57 = vld [vmem:[#allocation3] sm:$0x1] }
 0x14e   : > { %535 = vmatpush.msk.msra.mxu0 %vm298_vm2, %v372_v54  ;;  %647 = vset.pattern.permute.xlu0 %v806_v56  ;;  %v369_v58 = vmax.f32 %v368_v57, 1.0  ;;  %v407_v63 = vld [vmem:[%s1031_s3] sm:$0x1]  ;;  %v807_v2 = vmov 0.0  }
 0x150   : > { %648 = vrcp.f32 %v369_v58 }
 0x153   : > { %v371_v55 = vld [vmem:[#allocation2] sm:$0x1] }
 0x154   : > { %536 = vmatmul.msk.f32.vlgmr.msra.gmra.mxu0 %vm373_vm6, %v371_v55 }
 0x156   : > { %v649_v59 = vpop.eup %648 }
 0x157   : > { %402 = vperm.xlu0 %647, %v649_v59  }
 0x1c9   : > { %v403_v60 = vpop.permute.xlu0 %402 }
 0x1ca   : > { %v405_v61 = vperm.slane %v403_v60, 0 }
 0x1d1   : > { %v397_v62 = vpop.f32.mrf.mxu0 }
 0x1d2   : > { %v406_v0 = vmul.f32 %v405_v61, %v397_v62 }
 0x1d4   : > { %v408_v1 = vadd.f32 %v407_v63, %v406_v0 }
 0x1d6   : > { %vm409_vm7 = vcmp.ge.f32.partialorder %v408_v1, 0.0 }
 0x1d7   : > { %v537_v3 = vsel %vm409_vm7, 1.0, %v807_v2 }
 0x1d8   : > { %412 = vst [vmem:[%s956_s8] sm:$0x1] %v537_v3 }
 0x1d9 PF: > { %s422_s28 = scalar_lea.hbm %s1032_s4, %s790_s22  ;;  %s424_s17 = sshll.u32 %s956_s8, 4  ;;  %s425_s17 = int_to_ptr.vmem [resolvable:$true] %s424_s17 }
 0x1da   : > { %s426_s29 = sshll.u32 %s422_s28, 4  ;;  %s414_s12 = scalar_lea.sflag [#allocation6], %s253_s6  ;;  %s427_s29 = int_to_ptr.hbm [resolvable:$true] %s426_s29 }
 0x1db   : > { %s694_s13 = sshra.s32 %s427_s29, 4  ;;  %s700_s30 = scalar_lea.hbm %s1032_s4, 2  ;;  %s695_s13 = int_to_ptr.hbm [resolvable:$true] %s694_s13 }
 0x1dc   : > { %s696_s18 = scalar_lea.hbm %s695_s13, 1  ;;  %p701_p1 = scmp.lt.s32.totalorder %s695_s13, %s1032_s4 }
 0x1dd   : > { %p697_p11 = scmp.ne.s32.totalorder %s695_s13, %s696_s18  ;;  %p702_p4 = scmp.lt.s32.totalorder %s700_s30, %s696_s18 }
 0x1df   : > { %p698_p13 = pnand %p697_p11, %p915_p12  ;;  %p703_p5 = por %p702_p4, %p701_p1 }
 0x1e1   : > { %p699_p0 = pneg %p698_p13 }
 0x1e3   : > { %p704_p6 = pnand %p703_p5, %p699_p0 }
 0x1e5   : > { %707 = shalt.err (!%p704_p6)
}
 0x1e6   : > { %542 = dma.vmem_to_hbm [thread:$0]  (%p915_p12), %s425_s17, 16, %s427_s29, %s414_s12  }
 0x1e7 PF: > { %p553_p8 = scmp.ge.s32.totalorder %s802_s25, 2  ;;  %s438_s22 = sand.u32 1, %s762_s15  }
 0x1e8   : > { %s439_s6 = scalar_lea.sflag [#allocation6], %s438_s22 }
 0x1e9   : > { %p549_p3 = pnand %p553_p8, %p928_p2 }
 0x1eb   : > { %p550_p9 = pneg %p549_p3 }
 0x1ed   : > { %757 = dma.done.wait (%p550_p9), %s439_s6, 16  }
 0x1ee   : > { %759 = vsyncadd (%p550_p9), %s439_s6, 4294967280  ;;  %s20_s25 = sadd.s32 1, %s802_s25   ;;  %s1045_s8 = sld [smem:[#allocation10_spill]] }
 0x1ef   : > { %p17_p7 = scmp.ge.s32.totalorder %s20_s25, 6   ;;  %s1046_s17 = sld [smem:[#allocation13_spill]] }
 0x1f0   : > { %s1047_s11 = sld [smem:[#allocation14_spill]]  ;;  %s1050_s15 = smov %s766_s16 }
 0x1f1   : > { %s1048_s26 = sld [smem:[#allocation11_spill]]  ;;  %s1052_s18 = smov %s778_s19 }
 0x1f2   : > { %s1049_s5 = sld [smem:[#allocation12_spill]]  ;;  %s1053_s19 = smov %s782_s20 }
 0x1f3   : > { %s1055_s21 = smov %s794_s23  ;;  %s1056_s22 = smov %s798_s24 }
 0x1f4   : > { %s1051_s16 = smov %s1045_s8  ;;  %19 = sbr.rel (!%p17_p7) target bundleno = 9 (0x9), region = 96 }
 0x1f6   : > { %s1054_s20 = smov %s1047_s11 }
 0x1f7   : > { %s1057_s23 = smov %s1048_s26 }
 0x1f8   : > { %s1058_s24 = smov %s1049_s5 }
 0x1f9   :  { %444 = vsyncpa [#allocation5], 1 }
 0x1fa   :  { %446 = vsyncpa [#allocation5 + $0x1], 1 }
 0x1fb   :  { %447 = vsyncpa [#allocation6], 1 }
 0x1fc   :  { %449 = vsyncpa [#allocation6 + $0x1], 1 }

</bundles_post_ra>
